<compile_context>
chip_gen: v5e
topology: v5e:2x2
jax: 0.10.0
libtpu: 0.0.40
codegen_flags: <defaults>
</compile_context>

<pallas_src>
import jax
import jax.numpy as jnp
from jax.experimental import pallas as pl
from jax.experimental.pallas import tpu as pltpu


def _lin_kernel(x_ref, w_ref, b_ref, o_ref):
    # x_ref: (1, Cin, t_hw)   activation tile (lane axis = H*W, dense)
    # w_ref: (Cout, Cin)      1x1 conv weight with BN scale folded in
    # b_ref: (Cout, 1)        folded bias ((conv_b - mean) * scale + beta), f32
    # o_ref: (1, Cout, t_hw)  lane-dense output tile
    acc = jnp.dot(w_ref[...], x_ref[0], preferred_element_type=jnp.float32)
    y = acc + b_ref[...]
    o_ref[0] = jnp.maximum(y, 0.0).astype(o_ref.dtype)


def _round_up(a, b):
    return ((a + b - 1) // b) * b


def _vmem_budget_and_phys():
    """Per-generation VMEM plan: budget for our buffers + physical capacity."""
    try:
        phys = int(pltpu.get_tpu_info().vmem_capacity_bytes)
    except Exception:
        phys = 64 * 1024 * 1024  # conservative (v7x per-core physical VMEM)
    # ~40% of physical VMEM for our double-buffered tiles; leaves headroom for
    # compiler scratch.  (v6e/v5e: ~48 MiB cap; v7x: ~25 MiB.)
    budget = min(int(phys * 0.4), 48 * 1024 * 1024)
    return budget, phys


def lin_forward(x_nchw, conv_w, conv_b, bn_gamma, bn_beta, bn_mean, bn_var,
                eps=1e-5):
    """Forward of `lin`: ReLU(BN_eval(Conv2d_1x1(x))), NCHW in / NCHW out."""
    N, Cin, H, W = x_nchw.shape
    Cout = conv_w.shape[0]
    HW = H * W

    in_dtype = x_nchw.dtype
    # MXU-native compute dtype: keep narrow inputs narrow, otherwise f32.
    compute_dtype = (in_dtype if in_dtype in (jnp.bfloat16, jnp.float16)
                     else jnp.float32)

    # Fold BatchNorm (eval / running stats) into the conv weight and a bias.
    inv_std = 1.0 / jnp.sqrt(bn_var.astype(jnp.float32) + eps)
    scale = bn_gamma.astype(jnp.float32) * inv_std                    # (Cout,)
    w = (conv_w.reshape(Cout, Cin).astype(jnp.float32)
         * scale[:, None]).astype(compute_dtype)                      # (Cout, Cin)
    bias = ((conv_b.astype(jnp.float32) - bn_mean.astype(jnp.float32)) * scale
            + bn_beta.astype(jnp.float32)).reshape(Cout, 1)           # f32

    # NCHW stays put: (N, Cin, H*W) is a free view (no pad / transpose / cast).
    x = x_nchw.reshape(N, Cin, HW)

    # ---- lane-tile (t_hw) selection against the VMEM budget ------------------
    itemsize = jnp.dtype(in_dtype).itemsize
    w_itemsize = jnp.dtype(compute_dtype).itemsize
    sub_x = max(8, 8 * (4 // max(itemsize, 1)))      # sublane packing (f32:8, bf16:16)
    sub_w = max(8, 8 * (4 // max(w_itemsize, 1)))
    hw_pad128 = _round_up(HW, 128)

    budget, phys = _vmem_budget_and_phys()

    def tile_bytes(rows, cols, isz, sub):
        return _round_up(max(rows, 1), sub) * _round_up(max(cols, 1), 128) * isz

    # Conservative: count the weight/bias as double-buffered even though we
    # request Buffered(1) below.
    const_bytes = 2 * (tile_bytes(Cout, Cin, w_itemsize, sub_w)
                       + tile_bytes(Cout, 1, 4, 8))

    candidates = sorted(
        {c for c in (hw_pad128, 8192, 4096, 2048, 1024, 512, 256, 128)
         if c <= hw_pad128},
        reverse=True)

    t_hw, est = 128, None
    for cand in candidates:
        e = (2 * (tile_bytes(Cin, cand, itemsize, sub_x)
                  + tile_bytes(Cout, cand, itemsize, sub_x))
             + const_bytes)
        if e <= budget:
            t_hw, est = cand, e
            break
    if est is None:
        t_hw = 128
        est = (2 * (tile_bytes(Cin, t_hw, itemsize, sub_x)
                    + tile_bytes(Cout, t_hw, itemsize, sub_x))
               + const_bytes)

    # Both v7x TensorCores need work: keep >=2 steps on the parallel grid when
    # possible (N == 1, single-tile images).  Preserve the multiple-of-128
    # lane-tile invariant while shrinking.
    while N * pl.cdiv(HW, t_hw) < 2 and t_hw > 128:
        t_hw = max(128, _round_up(t_hw // 2, 128))

    grid = (N, pl.cdiv(HW, t_hw))
    vmem_limit = int(min(phys, max(2 * est, 32 * 1024 * 1024)))

    # ---- pallas_call ----------------------------------------------------------
    x_spec = pl.BlockSpec((1, Cin, t_hw), lambda n, j: (n, 0, j))
    out_spec = pl.BlockSpec((1, Cout, t_hw), lambda n, j: (n, 0, j))
    out_shape = jax.ShapeDtypeStruct((N, Cout, HW), in_dtype)
    cparams = pltpu.CompilerParams(
        dimension_semantics=("parallel", "parallel"),
        vmem_limit_bytes=vmem_limit)

    def call(single_buffer_consts):
        if single_buffer_consts:
            # Constant index_map -> the second pipeline buffer is pure waste;
            # single-buffer the resident weight/bias (matters on v7x's 64 MiB).
            w_spec = pl.BlockSpec((Cout, Cin), lambda n, j: (0, 0),
                                  pipeline_mode=pl.Buffered(1))
            b_spec = pl.BlockSpec((Cout, 1), lambda n, j: (0, 0),
                                  pipeline_mode=pl.Buffered(1))
        else:
            w_spec = pl.BlockSpec((Cout, Cin), lambda n, j: (0, 0))
            b_spec = pl.BlockSpec((Cout, 1), lambda n, j: (0, 0))
        return pl.pallas_call(
            _lin_kernel,
            out_shape=out_shape,
            grid_spec=pltpu.PrefetchScalarGridSpec(
                num_scalar_prefetch=0,
                grid=grid,
                in_specs=[x_spec, w_spec, b_spec],
                out_specs=out_spec),
            compiler_params=cparams,
        )(x, w, bias)

    try:
        out = call(True)
    except Exception:
        # pipeline_mode=Buffered(1) unsupported on this build: fall back to the
        # default double-buffered constants (correctness identical).
        out = call(False)

    # (N, Cout, H*W) -> NCHW is a free reshape (no transpose, no slice).
    return out.reshape(N, Cout, H, W)


def _reference(x_nchw, conv_w, conv_b, bn_gamma, bn_beta, bn_mean, bn_var,
               eps=1e-5):
    # Pure-JAX reference: 1x1 conv + eval-mode BN + ReLU.
    Cout, Cin = conv_w.shape[0], conv_w.shape[1]
    w = conv_w.reshape(Cout, Cin)
    xf = x_nchw.astype(jnp.float32)
    y = jnp.einsum("nchw,oc->nohw", xf, w.astype(jnp.float32))
    y = y + conv_b[None, :, None, None]
    y = (y - bn_mean[None, :, None, None]) / jnp.sqrt(
        bn_var[None, :, None, None] + eps)
    y = y * bn_gamma[None, :, None, None] + bn_beta[None, :, None, None]
    return jnp.maximum(y, 0.0)


if __name__ == "__main__":
    key = jax.random.PRNGKey(0)
    k_x, k_w, k_b, k_g, k_be, k_m, k_v, k_x2 = jax.random.split(key, 8)

    N, Cin, H, W = 2, 4, 16, 16
    Cout = 8

    x = jax.random.normal(k_x, (N, Cin, H, W), dtype=jnp.float32)
    conv_w = jax.random.normal(k_w, (Cout, Cin, 1, 1), dtype=jnp.float32) * 0.1
    conv_b = jax.random.normal(k_b, (Cout,), dtype=jnp.float32) * 0.1
    bn_gamma = 1.0 + 0.1 * jax.random.normal(k_g, (Cout,), dtype=jnp.float32)
    bn_beta = 0.1 * jax.random.normal(k_be, (Cout,), dtype=jnp.float32)
    bn_mean = 0.1 * jax.random.normal(k_m, (Cout,), dtype=jnp.float32)
    bn_var = jnp.abs(jax.random.normal(k_v, (Cout,), dtype=jnp.float32)) + 0.5

    out = lin_forward(x, conv_w, conv_b, bn_gamma, bn_beta, bn_mean, bn_var)
    out = jax.block_until_ready(out)
    ref = _reference(x, conv_w, conv_b, bn_gamma, bn_beta, bn_mean, bn_var)
    assert out.shape == (N, Cout, H, W)
    assert jnp.allclose(out, ref, atol=1e-4, rtol=1e-4)

    # Ragged-lane case (H*W not a multiple of 128) to exercise the cdiv grid
    # with Pallas clipping the last block (no pad / no output slice).
    H2, W2 = 15, 15
    x2 = jax.random.normal(k_x2, (1, Cin, H2, W2), dtype=jnp.float32)
    out2 = lin_forward(x2, conv_w, conv_b, bn_gamma, bn_beta, bn_mean, bn_var)
    out2 = jax.block_until_ready(out2)
    ref2 = _reference(x2, conv_w, conv_b, bn_gamma, bn_beta, bn_mean, bn_var)
    assert out2.shape == (1, Cout, H2, W2)
    assert jnp.allclose(out2, ref2, atol=1e-4, rtol=1e-4)

    print("KERNEL_OK")
</pallas_src>

<mosaic_0001>
module attributes {stable_mosaic.version = 11 : i64} {
  func.func @_lin_kernel(%arg0: i32, %arg1: i32, %arg2: memref<1x4x256xf32, #tpu.memory_space<vmem>>, %arg3: memref<8x4xf32, #tpu.memory_space<vmem>>, %arg4: memref<8x1xf32, #tpu.memory_space<vmem>>, %arg5: memref<1x8x256xf32, #tpu.memory_space<vmem>>) attributes {dimension_semantics = [#tpu.dimension_semantics<parallel>, #tpu.dimension_semantics<parallel>], iteration_bounds = array<i64: 2, 1>, scalar_prefetch = 0 : i64, scratch_operands = 0 : i64, tpu.core_type = #tpu.core_type<tc>, window_params = [{transform_indices = @transform_0, window_bounds = array<i64: 1, 4, 256>}, {pipeline_mode = #tpu.pipeline_mode<synchronous>, transform_indices = @transform_1, window_bounds = array<i64: 8, 4>}, {pipeline_mode = #tpu.pipeline_mode<synchronous>, transform_indices = @transform_2, window_bounds = array<i64: 8, 1>}, {transform_indices = @transform_3, window_bounds = array<i64: 1, 8, 256>}]} {
    %c0 = arith.constant 0 : index
    %c0_0 = arith.constant 0 : index
    %0 = vector.load %arg3[%c0, %c0_0] : memref<8x4xf32, #tpu.memory_space<vmem>>, vector<8x4xf32>
    %c0_1 = arith.constant 0 : index
    %c0_2 = arith.constant 0 : index
    %c0_3 = arith.constant 0 : index
    %1 = vector.load %arg2[%c0_1, %c0_2, %c0_3] : memref<1x4x256xf32, #tpu.memory_space<vmem>>, vector<1x4x256xf32>
    %2 = vector.shape_cast %1 : vector<1x4x256xf32> to vector<4x256xf32>
    %cst = arith.constant dense<0.000000e+00> : vector<8x256xf32>
    %3 = tpu.matmul %0, %2, %cst {dimension_numbers = #tpu.dot_dimension_numbers<[1], [0], [0], [1], [0, 0, 1, 1], [], []>} : vector<8x4xf32>, vector<4x256xf32>, vector<8x256xf32> -> vector<8x256xf32>
    %c0_4 = arith.constant 0 : index
    %c0_5 = arith.constant 0 : index
    %4 = vector.load %arg4[%c0_4, %c0_5] : memref<8x1xf32, #tpu.memory_space<vmem>>, vector<8x1xf32>
    %5 = vector.broadcast %4 : vector<8x1xf32> to vector<8x256xf32>
    %6 = arith.addf %3, %5 : vector<8x256xf32>
    %cst_6 = arith.constant 0.000000e+00 : f32
    %7 = vector.broadcast %cst_6 : f32 to vector<8x256xf32>
    %8 = arith.maximumf %6, %7 : vector<8x256xf32>
    %c0_7 = arith.constant 0 : index
    %c0_8 = arith.constant 0 : index
    %c0_9 = arith.constant 0 : index
    %9 = vector.load %arg5[%c0_7, %c0_8, %c0_9] : memref<1x8x256xf32, #tpu.memory_space<vmem>>, vector<1x8x256xf32>
    %10 = vector.shape_cast %9 : vector<1x8x256xf32> to vector<8x256xf32>
    %11 = vector.shape_cast %8 : vector<8x256xf32> to vector<1x8x256xf32>
    tpu.vector_store %arg5[%c0_7, %c0_8, %c0_9], %11 {strides = array<i32>} : memref<1x8x256xf32, #tpu.memory_space<vmem>>, vector<1x8x256xf32>,
    return
  }
  func.func @transform_0(%arg0: i32, %arg1: i32) -> (i32, i32, i32) {
    %c0_i32 = arith.constant 0 : i32
    %c0_i32_0 = arith.constant 0 : i32
    return %arg0, %c0_i32, %arg1 : i32, i32, i32
  }
  func.func @transform_1(%arg0: i32, %arg1: i32) -> (i32, i32) {
    %c0_i32 = arith.constant 0 : i32
    %c0_i32_0 = arith.constant 0 : i32
    %c0_i32_1 = arith.constant 0 : i32
    return %c0_i32, %c0_i32_0 : i32, i32
  }
  func.func @transform_2(%arg0: i32, %arg1: i32) -> (i32, i32) {
    %c0_i32 = arith.constant 0 : i32
    %c0_i32_0 = arith.constant 0 : i32
    %c0_i32_1 = arith.constant 0 : i32
    return %c0_i32, %c0_i32_0 : i32, i32
  }
  func.func @transform_3(%arg0: i32, %arg1: i32) -> (i32, i32, i32) {
    %c0_i32 = arith.constant 0 : i32
    %c0_i32_0 = arith.constant 0 : i32
    return %arg0, %c0_i32, %arg1 : i32, i32, i32
  }
}

module attributes {stable_mosaic.version = 11 : i64} {
  func.func @_lin_kernel(%arg0: i32, %arg1: i32, %arg2: memref<1x4x256xf32, #tpu.memory_space<vmem>>, %arg3: memref<8x4xf32, #tpu.memory_space<vmem>>, %arg4: memref<8x1xf32, #tpu.memory_space<vmem>>, %arg5: memref<1x8x256xf32, #tpu.memory_space<vmem>>) attributes {dimension_semantics = [#tpu.dimension_semantics<parallel>, #tpu.dimension_semantics<parallel>], iteration_bounds = array<i64: 2, 1>, scalar_prefetch = 0 : i64, scratch_operands = 0 : i64, tpu.core_type = #tpu.core_type<tc>, window_params = [{transform_indices = @transform_0, window_bounds = array<i64: 1, 4, 256>}, {pipeline_mode = #tpu.pipeline_mode<synchronous>, transform_indices = @transform_1, window_bounds = array<i64: 8, 4>}, {pipeline_mode = #tpu.pipeline_mode<synchronous>, transform_indices = @transform_2, window_bounds = array<i64: 8, 1>}, {transform_indices = @transform_3, window_bounds = array<i64: 1, 8, 256>}]} {
    %c0 = arith.constant 0 : index
    %c0_0 = arith.constant 0 : index
    %0 = vector.load %arg3[%c0, %c0_0] : memref<8x4xf32, #tpu.memory_space<vmem>>, vector<8x4xf32>
    %c0_1 = arith.constant 0 : index
    %c0_2 = arith.constant 0 : index
    %c0_3 = arith.constant 0 : index
    %1 = vector.load %arg2[%c0_1, %c0_2, %c0_3] : memref<1x4x256xf32, #tpu.memory_space<vmem>>, vector<1x4x256xf32>
    %2 = vector.shape_cast %1 : vector<1x4x256xf32> to vector<4x256xf32>
    %cst = arith.constant dense<0.000000e+00> : vector<8x256xf32>
    %3 = tpu.matmul %0, %2, %cst {dimension_numbers = #tpu.dot_dimension_numbers<[1], [0], [0], [1], [0, 0, 1, 1], [], []>} : vector<8x4xf32>, vector<4x256xf32>, vector<8x256xf32> -> vector<8x256xf32>
    %c0_4 = arith.constant 0 : index
    %c0_5 = arith.constant 0 : index
    %4 = vector.load %arg4[%c0_4, %c0_5] : memref<8x1xf32, #tpu.memory_space<vmem>>, vector<8x1xf32>
    %5 = vector.broadcast %4 : vector<8x1xf32> to vector<8x256xf32>
    %6 = arith.addf %3, %5 : vector<8x256xf32>
    %cst_6 = arith.constant 0.000000e+00 : f32
    %7 = vector.broadcast %cst_6 : f32 to vector<8x256xf32>
    %8 = arith.maximumf %6, %7 : vector<8x256xf32>
    %c0_7 = arith.constant 0 : index
    %c0_8 = arith.constant 0 : index
    %c0_9 = arith.constant 0 : index
    %9 = vector.load %arg5[%c0_7, %c0_8, %c0_9] : memref<1x8x256xf32, #tpu.memory_space<vmem>>, vector<1x8x256xf32>
    %10 = vector.shape_cast %9 : vector<1x8x256xf32> to vector<8x256xf32>
    %11 = vector.shape_cast %8 : vector<8x256xf32> to vector<1x8x256xf32>
    tpu.vector_store %arg5[%c0_7, %c0_8, %c0_9], %11 {strides = array<i32>} : memref<1x8x256xf32, #tpu.memory_space<vmem>>, vector<1x8x256xf32>,
    return
  }
  func.func @transform_0(%arg0: i32, %arg1: i32) -> (i32, i32, i32) {
    %c0_i32 = arith.constant 0 : i32
    %c0_i32_0 = arith.constant 0 : i32
    return %arg0, %c0_i32, %arg1 : i32, i32, i32
  }
  func.func @transform_1(%arg0: i32, %arg1: i32) -> (i32, i32) {
    %c0_i32 = arith.constant 0 : i32
    %c0_i32_0 = arith.constant 0 : i32
    %c0_i32_1 = arith.constant 0 : i32
    return %c0_i32, %c0_i32_0 : i32, i32
  }
  func.func @transform_2(%arg0: i32, %arg1: i32) -> (i32, i32) {
    %c0_i32 = arith.constant 0 : i32
    %c0_i32_0 = arith.constant 0 : i32
    %c0_i32_1 = arith.constant 0 : i32
    return %c0_i32, %c0_i32_0 : i32, i32
  }
  func.func @transform_3(%arg0: i32, %arg1: i32) -> (i32, i32, i32) {
    %c0_i32 = arith.constant 0 : i32
    %c0_i32_0 = arith.constant 0 : i32
    return %arg0, %c0_i32, %arg1 : i32, i32, i32
  }
}

</mosaic_0001>

<bundles_post_ra>
// kernel: tpu_custom_call.1
= control target key start
LH: loop header
LB: loop body
LE: loop exit
PB: predicated region body
PF: predicated region fallthrough
CT: control target
= control target key end

     0   :  { %8 = vsyncpa [#allocation3], 0  ;;  %s640_s0 = inlined_call_operand.vmem [shape: f32[2,4,256], index: 0, kind: input, shape index: {}]   ;;  %s641_s1 = inlined_call_operand.vmem [shape: f32[8,4], index: 1, kind: input, shape index: {}]   ;;  %s642_s2 = inlined_call_operand.vmem [shape: f32[8,1], index: 2, kind: input, shape index: {}]   ;;  %s643_s3 = inlined_call_operand.hbm [shape: f32[2,8,256], index: 3, kind: output, shape index: {}]  }
   0x1   :  { %10 = vsyncpa [#allocation3 + $0x1], 0  ;;  %s537_s12 = smov 0   ;;  %s539_s13 = smov 0  }
   0x2   :  { %s541_s14 = smov 0   ;;  %s543_s15 = smov 0  }
   0x3   :  { %s545_s16 = smov 0   ;;  %s547_s17 = smov 0  }
   0x4 LB: > { %s360_s18 = sadd.s32 4294967295, %s514_s17   ;;  %s361_s19 = sadd.s32 4294967294, %s514_s17   ;;  %s514_s17 = sphi %s547_s17, %s16_s17   ;;  %s510_s16 = sphi %s545_s16, %s650_s16   ;;  %s506_s15 = sphi %s543_s15, %s649_s15   ;;  %s502_s14 = sphi %s541_s14, %s648_s14   ;;  %s498_s13 = sphi %s539_s13, %s647_s13   ;;  %s494_s12 = sphi %s537_s12, %s646_s12  }
   0x5   : > { %s28_s20 = sadd.s32 1, %s510_s16  ;;  %s107_s21 = sadd.s32 1, %s502_s14 }
   0x6   : > { %p30_p0 = scmp.ge.s32.totalorder %s28_s20, 2  ;;  %p117_p1 = scmp.ne.s32.totalorder %s502_s14, %s498_s13 }
   0x7   : > { %p118_p2 = scmp.eq.s32.totalorder %s360_s18, 1  ;;  %p123_p3 = scmp.ne.s32.totalorder %s498_s13, %s494_s12 }
   0x8   : > { %s652_s20 = smov (%p30_p0, %s28_s20), 0  ;;  %p124_p5 = scmp.eq.s32.totalorder %s361_s19, 1 }
   0x9   : > { %p577_p4 = por %p118_p2, %p117_p1  ;;  %s102_s23 = ssub.s32 %s510_s16, %s652_s20 }
   0xa   : > { %p364_p6 = scmp.ge.s32.totalorder %s514_s17, 1  ;;  %p105_p7 = scmp.eq.s32.totalorder %s102_s23, 0 }
   0xb   : > { %p584_p8 = por %p124_p5, %p123_p3  ;;  %p161_p9 = scmp.lt.s32.totalorder %s514_s17, 3 }
   0xc   : > { %s590_s25 = scalar_select %p105_p7, %s502_s14, %s107_s21  }
   0xd   : > { %p162_p10 = pnand %p364_p6, %p161_p9 }
   0xe   : > { %p190_p11 = scmp.lt.s32.totalorder (!%p162_p10), %s506_s15, 1  ;;  %s186_s8 = sand.u32 (!%p162_p10), 1, %s498_s13  }
   0xf   : > { %165 = sbr.rel (%p162_p10) target bundleno = 168 (0xa8), region = 32  ;;  %s365_s9 = sshll.u32 (!%p162_p10), %s186_s8, 4 }
  0x10   : > { %s378_s10 = sshll.u32 (!%p162_p10), %s506_s15, 4  ;;  %s188_s21 = scalar_lea.vmem (!%p162_p10), [#allocation2], %s365_s9 }
  0x11   : > { %s279_s19 = scalar_lea.hbm (!%p162_p10), %s643_s3, %s378_s10  ;;  %s281_s23 = sshll.u32 (!%p162_p10), %s188_s21, 4  ;;  %s282_s23 = int_to_ptr.vmem [resolvable:$true] %s281_s23 }
  0x12   : > { %s283_s26 = sshll.u32 (!%p162_p10), %s279_s19, 4  ;;  %s456_s4 = scalar_lea.hbm (!%p162_p10), %s643_s3, 32  ;;  %s284_s26 = int_to_ptr.hbm [resolvable:$true] %s283_s26 }
  0x13   : > { %s450_s27 = sshra.s32 (!%p162_p10), %s284_s26, 4  ;;  %s451_s27 = int_to_ptr.hbm [resolvable:$true] %s450_s27 }
  0x14   : > { %v202_v0 = vld [vmem:[%s642_s2] sm:$0xff]  ;;  %v516_v1 = vmov 0   ;;  %s191_s28 = scalar_select %p190_p11, %s506_s15, 1  ;;  %vm216_vm0 = vcmask 1043456   ;;  %vm212_vm1 = vcmask 31744  }
  0x15   : > { %435 = vset.pattern.permute.xlu0 %v516_v1  ;;  %v200_v3 = vld [vmem:[%s641_s1] sm:$0xff]  ;;  %s266_s15 = scalar_lea.sflag [#allocation3], %s186_s8  ;;  %p457_p1 = scmp.lt.s32.totalorder %s451_s27, %s643_s3 }
  0x16   : > { %205 = vperm.xlu0 %435, %v202_v0   ;;  %s377_s29 = sshll.u32 %s191_s28, 3  ;;  %s452_s28 = scalar_lea.hbm %s451_s27, 16 }
  0x17   : > { %s197_s5 = scalar_lea.vmem %s640_s0, %s377_s29  ;;  %p453_p12 = scmp.ne.s32.totalorder %s451_s27, %s452_s28 }
  0x18   : > { %v201_v2 = vld [vmem:[%s197_s5] sm:$0xff]  ;;  %p458_p2 = scmp.lt.s32.totalorder %s456_s4, %s452_s28 }
  0x19   : > { %209 = vst [vmem:[#allocation1] ss:$2 sm:$0xff] %v201_v2  ;;  %p454_p13 = pnand %p453_p12, %p577_p4 }
  0x1a   : > { %p459_p3 = por %p458_p2, %p457_p1 }
  0x1b   : > { %p455_p0 = pneg %p454_p13 }
  0x1d   : > { %p460_p5 = pnand %p459_p3, %p455_p0 }
  0x20   : > { %v210_v4 = vld.sshfl [vmem:[#allocation1] sm:$0xff pattern:$0x75316420]  ;;  %v211_v5 = vld.sshfl [vmem:[#allocation1 + $0x8] sm:$0xff pattern:$0x75316420] }
  0x21   : > { %368 = vmatpush.msk.msra.mxu0 %vm216_vm0, %v210_v4  ;;  %370 = vmatpush.msk.msra.mxu1 %vm216_vm0, %v211_v5 }
  0x22   : > { %369 = vmatmul.msk.f32.vlgmr.msra.gmra.mxu0 %vm212_vm1, %v200_v3  ;;  %371 = vmatmul.msk.f32.vlgmr.msra.gmra.mxu1 %vm212_vm1, %v200_v3 }
  0x88   : > { %v206_v6 = vpop.permute.xlu0 %205 }
  0x9f   : > { %v238_v7 = vpop.f32.mrf.mxu0  ;;  %v258_v8 = vpop.f32.mrf.mxu1 }
  0xa0   : > { %v239_v9 = vadd.f32 %v238_v7, %v206_v6  ;;  %v259_v10 = vadd.f32 %v258_v8, %v206_v6 }
  0xa2   : > { %v261_v11 = vmax.f32 %v239_v9, 0.0  ;;  %v262_v12 = vmax.f32 %v259_v10, 0.0 }
  0xa4   : > { %263 = vst [vmem:[%s188_s21] sm:$0xff] %v261_v11 }
  0xa5   : > { %264 = vst [vmem:[%s188_s21 + $0x8] sm:$0xff] %v262_v12 }
  0xa6   : > { %463 = shalt.err (!%p460_p5)
}
  0xa7   : > { %379 = dma.vmem_to_hbm [thread:$0]  (%p577_p4), %s282_s23, 256, %s284_s26, %s266_s15  }
  0xa8 PF: > { %p385_p6 = scmp.ge.s32.totalorder %s514_s17, 2  ;;  %s295_s7 = sand.u32 1, %s494_s12  }
  0xa9   : > { %s296_s8 = scalar_lea.sflag [#allocation3], %s295_s7 }
  0xaa   : > { %p382_p7 = pnand %p385_p6, %p584_p8 }
  0xac   : > { %p383_p9 = pneg %p382_p7 }
  0xae   : > { %489 = dma.done.wait (%p383_p9), %s296_s8, 256  }
  0xaf   : > { %491 = vsyncadd (%p383_p9), %s296_s8, 4294967040  ;;  %s16_s17 = sadd.s32 1, %s514_s17   ;;  %s646_s12 = smov %s498_s13 }
  0xb0   : > { %p13_p10 = scmp.ge.s32.totalorder %s16_s17, 4   ;;  %s647_s13 = smov %s502_s14 }
  0xb1   : > { %s648_s14 = smov %s590_s25  ;;  %s649_s15 = smov %s510_s16 }
  0xb2   : > { %s650_s16 = smov %s652_s20  ;;  %15 = sbr.rel (!%p13_p10) target bundleno = 4 (0x4), region = 67 }
  0xb7   :  { %302 = vsyncpa [#allocation3], 1 }
  0xb8   :  { %304 = vsyncpa [#allocation3 + $0x1], 1 }

// kernel: tpu_custom_call.1
= control target key start
LH: loop header
LB: loop body
LE: loop exit
PB: predicated region body
PF: predicated region fallthrough
CT: control target
= control target key end

     0   :  { %8 = vsyncpa [#allocation3], 0  ;;  %s640_s0 = inlined_call_operand.vmem [shape: f32[2,4,256], index: 0, kind: input, shape index: {}]   ;;  %s641_s1 = inlined_call_operand.vmem [shape: f32[8,4], index: 1, kind: input, shape index: {}]   ;;  %s642_s2 = inlined_call_operand.vmem [shape: f32[8,1], index: 2, kind: input, shape index: {}]   ;;  %s643_s3 = inlined_call_operand.hbm [shape: f32[2,8,256], index: 3, kind: output, shape index: {}]  }
   0x1   :  { %10 = vsyncpa [#allocation3 + $0x1], 0  ;;  %s537_s12 = smov 0   ;;  %s539_s13 = smov 0  }
   0x2   :  { %s541_s14 = smov 0   ;;  %s543_s15 = smov 0  }
   0x3   :  { %s545_s16 = smov 0   ;;  %s547_s17 = smov 0  }
   0x4 LB: > { %s360_s18 = sadd.s32 4294967295, %s514_s17   ;;  %s361_s19 = sadd.s32 4294967294, %s514_s17   ;;  %s514_s17 = sphi %s547_s17, %s16_s17   ;;  %s510_s16 = sphi %s545_s16, %s650_s16   ;;  %s506_s15 = sphi %s543_s15, %s649_s15   ;;  %s502_s14 = sphi %s541_s14, %s648_s14   ;;  %s498_s13 = sphi %s539_s13, %s647_s13   ;;  %s494_s12 = sphi %s537_s12, %s646_s12  }
   0x5   : > { %s28_s20 = sadd.s32 1, %s510_s16  ;;  %s107_s21 = sadd.s32 1, %s502_s14 }
   0x6   : > { %p30_p0 = scmp.ge.s32.totalorder %s28_s20, 2  ;;  %p117_p1 = scmp.ne.s32.totalorder %s502_s14, %s498_s13 }
   0x7   : > { %p118_p2 = scmp.eq.s32.totalorder %s360_s18, 1  ;;  %p123_p3 = scmp.ne.s32.totalorder %s498_s13, %s494_s12 }
   0x8   : > { %s652_s20 = smov (%p30_p0, %s28_s20), 0  ;;  %p124_p5 = scmp.eq.s32.totalorder %s361_s19, 1 }
   0x9   : > { %p577_p4 = por %p118_p2, %p117_p1  ;;  %s102_s23 = ssub.s32 %s510_s16, %s652_s20 }
   0xa   : > { %p364_p6 = scmp.ge.s32.totalorder %s514_s17, 1  ;;  %p105_p7 = scmp.eq.s32.totalorder %s102_s23, 0 }
   0xb   : > { %p584_p8 = por %p124_p5, %p123_p3  ;;  %p161_p9 = scmp.lt.s32.totalorder %s514_s17, 3 }
   0xc   : > { %s590_s25 = scalar_select %p105_p7, %s502_s14, %s107_s21  }
   0xd   : > { %p162_p10 = pnand %p364_p6, %p161_p9 }
   0xe   : > { %p190_p11 = scmp.lt.s32.totalorder (!%p162_p10), %s506_s15, 1  ;;  %s186_s8 = sand.u32 (!%p162_p10), 1, %s498_s13  }
   0xf   : > { %165 = sbr.rel (%p162_p10) target bundleno = 168 (0xa8), region = 32  ;;  %s365_s9 = sshll.u32 (!%p162_p10), %s186_s8, 4 }
  0x10   : > { %s378_s10 = sshll.u32 (!%p162_p10), %s506_s15, 4  ;;  %s188_s21 = scalar_lea.vmem (!%p162_p10), [#allocation2], %s365_s9 }
  0x11   : > { %s279_s19 = scalar_lea.hbm (!%p162_p10), %s643_s3, %s378_s10  ;;  %s281_s23 = sshll.u32 (!%p162_p10), %s188_s21, 4  ;;  %s282_s23 = int_to_ptr.vmem [resolvable:$true] %s281_s23 }
  0x12   : > { %s283_s26 = sshll.u32 (!%p162_p10), %s279_s19, 4  ;;  %s456_s4 = scalar_lea.hbm (!%p162_p10), %s643_s3, 32  ;;  %s284_s26 = int_to_ptr.hbm [resolvable:$true] %s283_s26 }
  0x13   : > { %s450_s27 = sshra.s32 (!%p162_p10), %s284_s26, 4  ;;  %s451_s27 = int_to_ptr.hbm [resolvable:$true] %s450_s27 }
  0x14   : > { %v202_v0 = vld [vmem:[%s642_s2] sm:$0xff]  ;;  %v516_v1 = vmov 0   ;;  %s191_s28 = scalar_select %p190_p11, %s506_s15, 1  ;;  %vm216_vm0 = vcmask 1043456   ;;  %vm212_vm1 = vcmask 31744  }
  0x15   : > { %435 = vset.pattern.permute.xlu0 %v516_v1  ;;  %v200_v3 = vld [vmem:[%s641_s1] sm:$0xff]  ;;  %s266_s15 = scalar_lea.sflag [#allocation3], %s186_s8  ;;  %p457_p1 = scmp.lt.s32.totalorder %s451_s27, %s643_s3 }
  0x16   : > { %205 = vperm.xlu0 %435, %v202_v0   ;;  %s377_s29 = sshll.u32 %s191_s28, 3  ;;  %s452_s28 = scalar_lea.hbm %s451_s27, 16 }
  0x17   : > { %s197_s5 = scalar_lea.vmem %s640_s0, %s377_s29  ;;  %p453_p12 = scmp.ne.s32.totalorder %s451_s27, %s452_s28 }
  0x18   : > { %v201_v2 = vld [vmem:[%s197_s5] sm:$0xff]  ;;  %p458_p2 = scmp.lt.s32.totalorder %s456_s4, %s452_s28 }
  0x19   : > { %209 = vst [vmem:[#allocation1] ss:$2 sm:$0xff] %v201_v2  ;;  %p454_p13 = pnand %p453_p12, %p577_p4 }
  0x1a   : > { %p459_p3 = por %p458_p2, %p457_p1 }
  0x1b   : > { %p455_p0 = pneg %p454_p13 }
  0x1d   : > { %p460_p5 = pnand %p459_p3, %p455_p0 }
  0x20   : > { %v210_v4 = vld.sshfl [vmem:[#allocation1] sm:$0xff pattern:$0x75316420]  ;;  %v211_v5 = vld.sshfl [vmem:[#allocation1 + $0x8] sm:$0xff pattern:$0x75316420] }
  0x21   : > { %368 = vmatpush.msk.msra.mxu0 %vm216_vm0, %v210_v4  ;;  %370 = vmatpush.msk.msra.mxu1 %vm216_vm0, %v211_v5 }
  0x22   : > { %369 = vmatmul.msk.f32.vlgmr.msra.gmra.mxu0 %vm212_vm1, %v200_v3  ;;  %371 = vmatmul.msk.f32.vlgmr.msra.gmra.mxu1 %vm212_vm1, %v200_v3 }
  0x88   : > { %v206_v6 = vpop.permute.xlu0 %205 }
  0x9f   : > { %v238_v7 = vpop.f32.mrf.mxu0  ;;  %v258_v8 = vpop.f32.mrf.mxu1 }
  0xa0   : > { %v239_v9 = vadd.f32 %v238_v7, %v206_v6  ;;  %v259_v10 = vadd.f32 %v258_v8, %v206_v6 }
  0xa2   : > { %v261_v11 = vmax.f32 %v239_v9, 0.0  ;;  %v262_v12 = vmax.f32 %v259_v10, 0.0 }
  0xa4   : > { %263 = vst [vmem:[%s188_s21] sm:$0xff] %v261_v11 }
  0xa5   : > { %264 = vst [vmem:[%s188_s21 + $0x8] sm:$0xff] %v262_v12 }
  0xa6   : > { %463 = shalt.err (!%p460_p5)
}
  0xa7   : > { %379 = dma.vmem_to_hbm [thread:$0]  (%p577_p4), %s282_s23, 256, %s284_s26, %s266_s15  }
  0xa8 PF: > { %p385_p6 = scmp.ge.s32.totalorder %s514_s17, 2  ;;  %s295_s7 = sand.u32 1, %s494_s12  }
  0xa9   : > { %s296_s8 = scalar_lea.sflag [#allocation3], %s295_s7 }
  0xaa   : > { %p382_p7 = pnand %p385_p6, %p584_p8 }
  0xac   : > { %p383_p9 = pneg %p382_p7 }
  0xae   : > { %489 = dma.done.wait (%p383_p9), %s296_s8, 256  }
  0xaf   : > { %491 = vsyncadd (%p383_p9), %s296_s8, 4294967040  ;;  %s16_s17 = sadd.s32 1, %s514_s17   ;;  %s646_s12 = smov %s498_s13 }
  0xb0   : > { %p13_p10 = scmp.ge.s32.totalorder %s16_s17, 4   ;;  %s647_s13 = smov %s502_s14 }
  0xb1   : > { %s648_s14 = smov %s590_s25  ;;  %s649_s15 = smov %s510_s16 }
  0xb2   : > { %s650_s16 = smov %s652_s20  ;;  %15 = sbr.rel (!%p13_p10) target bundleno = 4 (0x4), region = 67 }
  0xb7   :  { %302 = vsyncpa [#allocation3], 1 }
  0xb8   :  { %304 = vsyncpa [#allocation3 + $0x1], 1 }

</bundles_post_ra>
